<compile_context>
chip_gen: v7x
topology: tpu7x:2x2x1
jax: 0.10.0
libtpu: 0.0.40
codegen_flags: <defaults>
</compile_context>

<pallas_src>
import functools

import jax
import jax.numpy as jnp
import numpy as np
from jax.experimental import pallas as pl
from jax.experimental.pallas import tpu as pltpu


def _round_up(x, m):
    return ((x + m - 1) // m) * m


def _linear_kernel(x_ref, w_ref, b_ref, o_ref, acc_ref):
    # x_ref: (tm, tk) bf16    w_ref: (tk, tn) bf16    b_ref: (1, tn) f32
    # o_ref: (tm, tn) f32     acc_ref: (tm, tn) f32 VMEM scratch
    k = pl.program_id(2)

    @pl.when(k == 0)
    def _():
        acc_ref[...] = jnp.zeros_like(acc_ref)

    acc_ref[...] += jnp.dot(x_ref[...], w_ref[...],
                            preferred_element_type=jnp.float32)

    @pl.when(k == pl.num_programs(2) - 1)
    def _():
        o_ref[...] = (acc_ref[...] + b_ref[...]).astype(o_ref.dtype)


def standardize_weight(weight, gain):
    # OTTT scaled-weight-standardization (torch.var is unbiased -> ddof=1).
    # Only used when OTTT_sWS_on=True; plain JAX glue on the parameter.
    fan_in = weight.shape[1]
    mean = jnp.mean(weight, axis=1, keepdims=True)
    var = jnp.var(weight, axis=1, keepdims=True, ddof=1)
    w = (weight - mean) / (var * fan_in + 0.0001) ** 0.5
    return w * gain


@functools.partial(jax.jit, static_argnames=("tm", "tn", "tk"))
def synapse_fc_forward(spike, weight, bias, *, tm=512, tn=512, tk=512):
    """F.linear(spike, weight, bias): out = spike @ weight.T + bias."""
    lead = spike.shape[:-1]
    K = spike.shape[-1]
    N, Kw = weight.shape
    assert K == Kw
    M = int(np.prod(lead)) if lead else 1

    # bf16 MXU path. Spikes are {0,1}, so the activation cast is exact.
    x = spike.reshape(M, K).astype(jnp.bfloat16)
    w = weight.T.astype(jnp.bfloat16)                  # (K, N)
    b = bias.reshape(1, N).astype(jnp.float32)

    # Tile sizes respecting the (8,128) layout rule; shrink to the rounded
    # full dim when the array is smaller than the requested tile.
    tm_ = min(tm, _round_up(M, 8))
    tk_ = min(tk, _round_up(K, 128))
    tn_ = min(tn, _round_up(N, 128))
    Mp, Kp, Np = _round_up(M, tm_), _round_up(K, tk_), _round_up(N, tn_)

    if (Mp, Kp) != (M, K):
        x = jnp.pad(x, ((0, Mp - M), (0, Kp - K)))
    if (Kp, Np) != (K, N):
        w = jnp.pad(w, ((0, Kp - K), (0, Np - N)))
    if Np != N:
        b = jnp.pad(b, ((0, 0), (0, Np - N)))

    grid = (Mp // tm_, Np // tn_, Kp // tk_)

    out = pl.pallas_call(
        _linear_kernel,
        out_shape=jax.ShapeDtypeStruct((Mp, Np), jnp.float32),
        grid_spec=pltpu.PrefetchScalarGridSpec(
            num_scalar_prefetch=0,
            grid=grid,
            in_specs=[
                pl.BlockSpec((tm_, tk_), lambda i, j, k: (i, k)),   # activations
                pl.BlockSpec((tk_, tn_), lambda i, j, k: (k, j)),   # weight^T
                pl.BlockSpec((1, tn_), lambda i, j, k: (0, j)),     # bias row
            ],
            out_specs=pl.BlockSpec((tm_, tn_), lambda i, j, k: (i, j)),
            scratch_shapes=[pltpu.VMEM((tm_, tn_), jnp.float32)],
        ),
        compiler_params=pltpu.CompilerParams(
            dimension_semantics=("parallel", "parallel", "arbitrary"),
        ),
        cost_estimate=pl.CostEstimate(
            flops=2 * Mp * Kp * Np,
            transcendentals=0,
            bytes_accessed=Mp * Kp * 2 + Kp * Np * 2 + Mp * Np * 4,
        ),
    )(x, w, b)

    return out[:M, :N].reshape(*lead, N)


def init_params(key, in_features, out_features):
    # nn.init.xavier_uniform_ on weight, zeros on bias, ones on gain.
    bound = float(np.sqrt(6.0 / (in_features + out_features)))
    weight = jax.random.uniform(
        key, (out_features, in_features), jnp.float32, minval=-bound, maxval=bound)
    bias = jnp.zeros((out_features,), jnp.float32)
    gain = jnp.ones((out_features, 1), jnp.float32)  # only used if OTTT_sWS_on
    return weight, bias, gain


if __name__ == "__main__":
    key = jax.random.PRNGKey(0)
    k_x, k_w = jax.random.split(key)

    batch, in_features, out_features = 2, 32, 32

    # SNN spike input: binary {0,1}.
    spike = jax.random.bernoulli(
        k_x, 0.5, (batch, in_features)).astype(jnp.float32)
    weight, bias, gain = init_params(k_w, in_features, out_features)

    # OTTT_sWS_on = False (module default): use raw weight.
    # TODO(synk): trace_const1/2 and TIME are unused in this module's forward.
    out = synapse_fc_forward(spike, weight, bias)
    out = jax.block_until_ready(out)

    # Reference: F.linear in f32.
    ref = spike @ weight.T + bias[None, :]
    assert out.shape == (batch, out_features)
    # bf16 weight cast inside the kernel -> slightly relaxed tolerance.
    assert jnp.allclose(out, ref, atol=3e-2, rtol=3e-2), \
        float(jnp.max(jnp.abs(out - ref)))

    print("KERNEL_OK")
</pallas_src>

<mosaic_0001>
module attributes {stable_mosaic.version = 11 : i64} {
  func.func @_linear_kernel(%arg0: i32, %arg1: i32, %arg2: i32, %arg3: memref<8x128xbf16, #tpu.memory_space<vmem>>, %arg4: memref<128x128xbf16, #tpu.memory_space<vmem>>, %arg5: memref<1x128xf32, #tpu.memory_space<vmem>>, %arg6: memref<8x128xf32, #tpu.memory_space<vmem>>, %arg7: memref<8x128xf32, #tpu.memory_space<vmem>>) attributes {dimension_semantics = [#tpu.dimension_semantics<parallel>, #tpu.dimension_semantics<parallel>, #tpu.dimension_semantics<arbitrary>], iteration_bounds = array<i64: 1, 1, 1>, scalar_prefetch = 0 : i64, scratch_operands = 1 : i64, tpu.core_type = #tpu.core_type<tc>, window_params = [{transform_indices = @transform_0, window_bounds = array<i64: 8, 128>}, {transform_indices = @transform_1, window_bounds = array<i64: 128, 128>}, {transform_indices = @transform_2, window_bounds = array<i64: 1, 128>}, {transform_indices = @transform_3, window_bounds = array<i64: 8, 128>}]} {
    %c0_i32 = arith.constant 0 : i32
    %0 = arith.cmpi eq, %arg2, %c0_i32 : i32
    %1 = arith.extui %0 : i1 to i32
    %c0_i32_0 = arith.constant 0 : i32
    %2 = arith.cmpi ne, %1, %c0_i32_0 : i32
    scf.if %2 {
      %cst_10 = arith.constant 0.000000e+00 : f32
      %12 = vector.broadcast %cst_10 : f32 to vector<8x128xf32>
      %c0_11 = arith.constant 0 : index
      %c0_12 = arith.constant 0 : index
      %13 = vector.load %arg7[%c0_11, %c0_12] : memref<8x128xf32, #tpu.memory_space<vmem>>, vector<8x128xf32>
      tpu.vector_store %arg7[%c0_11, %c0_12], %12 {strides = array<i32>} : memref<8x128xf32, #tpu.memory_space<vmem>>, vector<8x128xf32>,
    } else {
    }
    %c0 = arith.constant 0 : index
    %c0_1 = arith.constant 0 : index
    %3 = vector.load %arg7[%c0, %c0_1] : memref<8x128xf32, #tpu.memory_space<vmem>>, vector<8x128xf32>
    %c0_2 = arith.constant 0 : index
    %c0_3 = arith.constant 0 : index
    %4 = vector.load %arg3[%c0_2, %c0_3] : memref<8x128xbf16, #tpu.memory_space<vmem>>, vector<8x128xbf16>
    %c0_4 = arith.constant 0 : index
    %c0_5 = arith.constant 0 : index
    %5 = vector.load %arg4[%c0_4, %c0_5] : memref<128x128xbf16, #tpu.memory_space<vmem>>, vector<128x128xbf16>
    %cst = arith.constant dense<0.000000e+00> : vector<8x128xf32>
    %6 = tpu.matmul %4, %5, %cst {dimension_numbers = #tpu.dot_dimension_numbers<[1], [0], [0], [1], [0, 0, 1, 1], [], []>} : vector<8x128xbf16>, vector<128x128xbf16>, vector<8x128xf32> -> vector<8x128xf32>
    %7 = arith.addf %3, %6 : vector<8x128xf32>
    %c0_6 = arith.constant 0 : index
    %c0_7 = arith.constant 0 : index
    %8 = vector.load %arg7[%c0_6, %c0_7] : memref<8x128xf32, #tpu.memory_space<vmem>>, vector<8x128xf32>
    tpu.vector_store %arg7[%c0_6, %c0_7], %7 {strides = array<i32>} : memref<8x128xf32, #tpu.memory_space<vmem>>, vector<8x128xf32>,
    %c0_i32_8 = arith.constant 0 : i32
    %9 = arith.cmpi eq, %arg2, %c0_i32_8 : i32
    %10 = arith.extui %9 : i1 to i32
    %c0_i32_9 = arith.constant 0 : i32
    %11 = arith.cmpi ne, %10, %c0_i32_9 : i32
    scf.if %11 {
      %c0_10 = arith.constant 0 : index
      %c0_11 = arith.constant 0 : index
      %12 = vector.load %arg7[%c0_10, %c0_11] : memref<8x128xf32, #tpu.memory_space<vmem>>, vector<8x128xf32>
      %c0_12 = arith.constant 0 : index
      %c0_13 = arith.constant 0 : index
      %13 = vector.load %arg5[%c0_12, %c0_13] : memref<1x128xf32, #tpu.memory_space<vmem>>, vector<1x128xf32>
      %14 = vector.broadcast %13 : vector<1x128xf32> to vector<8x128xf32>
      %15 = arith.addf %12, %14 : vector<8x128xf32>
      %c0_14 = arith.constant 0 : index
      %c0_15 = arith.constant 0 : index
      %16 = vector.load %arg6[%c0_14, %c0_15] : memref<8x128xf32, #tpu.memory_space<vmem>>, vector<8x128xf32>
      tpu.vector_store %arg6[%c0_14, %c0_15], %15 {strides = array<i32>} : memref<8x128xf32, #tpu.memory_space<vmem>>, vector<8x128xf32>,
    } else {
    }
    return
  }
  func.func @transform_0(%arg0: i32, %arg1: i32, %arg2: i32) -> (i32, i32) {
    %c0_i32 = arith.constant 0 : i32
    return %arg0, %arg2 : i32, i32
  }
  func.func @transform_1(%arg0: i32, %arg1: i32, %arg2: i32) -> (i32, i32) {
    %c0_i32 = arith.constant 0 : i32
    return %arg2, %arg1 : i32, i32
  }
  func.func @transform_2(%arg0: i32, %arg1: i32, %arg2: i32) -> (i32, i32) {
    %c0_i32 = arith.constant 0 : i32
    %c0_i32_0 = arith.constant 0 : i32
    return %c0_i32, %arg1 : i32, i32
  }
  func.func @transform_3(%arg0: i32, %arg1: i32, %arg2: i32) -> (i32, i32) {
    %c0_i32 = arith.constant 0 : i32
    return %arg0, %arg1 : i32, i32
  }
}

</mosaic_0001>

<bundles_post_ra>
// kernel: synapse_fc_forward.1
= control target key start
LH: loop header
LB: loop body
LE: loop exit
PB: predicated region body
PF: predicated region fallthrough
CT: control target
= control target key end

     0   :  { %v193_v0 = vmov 0.0   ;;  %vm194_vm0 = vmmov 0   ;;  %s248_s1 = inlined_call_operand.vmem [shape: bf16[128,128], index: 1, kind: input, shape index: {}]   ;;  %s249_s0 = inlined_call_operand.vmem [shape: bf16[8,128], index: 0, kind: input, shape index: {}]   ;;  %s250_s2 = inlined_call_operand.vmem [shape: f32[1,128], index: 2, kind: input, shape index: {}]   ;;  %s251_s3 = inlined_call_operand.vmem [shape: f32[8,128], index: 3, kind: output, shape index: {}]  }
   0x1   :  { %163 = vmatprep.subr.bf16.mxu0 %v193_v0  ;;  %v185_v1 = vld [vmem:[%s248_s1] sm:$0xff]   ;;  %179 = vmatprep.mubr.msk.bf16.mxu0 %vm194_vm0, %v193_v0  ;;  %v186_v2 = vld [vmem:[%s248_s1 + $0x8] sm:$0xff]   ;;  %v187_v3 = vld [vmem:[%s248_s1 + $0x10] sm:$0xff]  }
   0x2   :  { %164 = vmatpush3.bf16.msra.mxu0 %v185_v1  ;;  %v188_v4 = vld [vmem:[%s248_s1 + $0x18] sm:$0xff]   ;;  %v189_v5 = vld [vmem:[%s248_s1 + $0x20] sm:$0xff]   ;;  %v190_v6 = vld [vmem:[%s248_s1 + $0x28] sm:$0xff]  }
   0x3   :  { %165 = vmatprep.subr.bf16.mxu0 %v193_v0  ;;  %v191_v7 = vld [vmem:[%s248_s1 + $0x30] sm:$0xff]   ;;  %v192_v8 = vld [vmem:[%s248_s1 + $0x38] sm:$0xff]   ;;  %v21_v9 = vld [vmem:[%s249_s0] sm:$0xf] }
   0x4   :  { %v153_v10 = vld [vmem:[%s250_s2] ss:$0 sm:$0xff] }
   0x6   :  { %166 = vmatpush3.bf16.msra.mxu0 %v186_v2 }
   0x7   :  { %167 = vmatprep.subr.bf16.mxu0 %v193_v0 }
   0xa   :  { %168 = vmatpush3.bf16.msra.mxu0 %v187_v3 }
   0xb   :  { %169 = vmatprep.subr.bf16.mxu0 %v193_v0 }
   0xe   :  { %170 = vmatpush3.bf16.msra.mxu0 %v188_v4 }
   0xf   :  { %171 = vmatprep.subr.bf16.mxu0 %v193_v0 }
  0x12   :  { %172 = vmatpush3.bf16.msra.mxu0 %v189_v5 }
  0x13   :  { %173 = vmatprep.subr.bf16.mxu0 %v193_v0 }
  0x16   :  { %174 = vmatpush3.bf16.msra.mxu0 %v190_v6 }
  0x17   :  { %175 = vmatprep.subr.bf16.mxu0 %v193_v0 }
  0x1a   :  { %176 = vmatpush3.bf16.msra.mxu0 %v191_v7 }
  0x1b   :  { %177 = vmatprep.subr.bf16.mxu0 %v193_v0 }
  0x1e   :  { %178 = vmatpush3.bf16.msra.mxu0 %v192_v8 }
  0x21   :  { %180 = vmatmul.mubr.bf16.vlgmr.msra.gmra.mrb[0].mxu0 %v21_v9 }
  0xf4   :  { %v120_v11 = vpop.f32.mrb[0].mxu0 }
  0xf5   :  { %v139_v12 = vadd.f32 %v153_v10, %v120_v11  ;;  %v181_v13 = vpop.f32.mrb[1].mxu0 }
  0xf6   :  { %v123_v14 = vpop.f32.mrb[2].mxu0 }
  0xf7   :  { %140 = vst [vmem:[%s251_s3] sm:$0xff] %v139_v12  ;;  %v182_v15 = vpop.f32.mrb[3].mxu0 }

</bundles_post_ra>
